<compile_context>
chip_gen: v5e
topology: v5e:2x2
jax: 0.10.0
libtpu: 0.0.40
codegen_flags: <defaults>
</compile_context>

<pallas_src>
import functools

import jax
import jax.numpy as jnp
from jax import lax
from jax.experimental import pallas as pl
from jax.experimental.pallas import tpu as pltpu

_LANES = 128
_SUBLANES = 8


def _siamese_loss_kernel(scalars_ref, o1_ref, o2_ref, partial_ref, *,
                         tile_rows: int, total_rows: int, ragged: bool):
    margin = scalars_ref[0]

    # Elementwise hot path on the VPU (cast in-kernel; DMA stays native dtype).
    x1 = o1_ref[...].astype(jnp.float32)
    x2 = o2_ref[...].astype(jnp.float32)
    hinge = jnp.maximum(x1 - x2 + margin, 0.0)

    if ragged:
        # Mask rows past the true extent (the last block overhangs the array;
        # its trailing rows hold unspecified data).
        i = pl.program_id(0)
        row = lax.broadcasted_iota(jnp.int32, hinge.shape, 0) + i * tile_rows
        hinge = jnp.where(row < total_rows, hinge, 0.0)

    # Row-reduce the tile to a single lane vector.  The bulk is plain vreg
    # adds on the VPU; only one 8-sublane fold per multi-MiB block touches the
    # XLU, which is negligible for this HBM-bound op.
    partial_ref[...] = jnp.sum(hinge, axis=0, keepdims=True)[None]


def _as_2d(x: jax.Array) -> jax.Array:
    """Present the input as (rows, cols) without touching the minor dim."""
    if x.ndim == 0:
        return x.reshape(1, 1)
    if x.ndim == 1:
        n = x.shape[0]
        if n % _LANES == 0:
            return x.reshape(n // _LANES, _LANES)
        return x.reshape(1, n)
    if x.ndim == 2:
        return x
    # Collapse leading dims only; the lane (last) dim is untouched.
    return x.reshape(-1, x.shape[-1])


def _choose_tile_rows(rows: int, cols: int, itemsize: int) -> int:
    # ~2 MiB per-input block for f32, ~4 MiB for bf16/int8 - near the measured
    # HBM-roofline knee, and 2 inputs x 2 buffers stays <= 16 MiB of VMEM.
    target = (4 << 20) if itemsize <= 2 else (2 << 20)
    tr = (target // max(1, cols * itemsize)) // _SUBLANES * _SUBLANES
    tr = max(_SUBLANES, tr)
    if tr >= rows:
        return rows  # single row-block; a full-extent block dim is always legal
    return tr


def siamese_loss(output1: jax.Array, output2: jax.Array, margin: float = 0.5) -> jax.Array:
    assert output1.shape == output2.shape, (output1.shape, output2.shape)
    assert output1.dtype == output2.dtype, (output1.dtype, output2.dtype)
    n = output1.size
    assert n > 0

    o1 = _as_2d(output1)
    o2 = _as_2d(output2)
    rows, cols = o1.shape
    itemsize = o1.dtype.itemsize

    tile_rows = _choose_tile_rows(rows, cols, itemsize)
    num_blocks = pl.cdiv(rows, tile_rows)
    ragged = (rows % tile_rows) != 0

    block_bytes = tile_rows * cols * itemsize
    # 2 inputs x 2 pipeline buffers + small partial-output buffers + headroom,
    # floored at 32 MiB; capped at v7x's 64 MiB physical VMEM.
    vmem_limit = int(min(64 << 20, max(32 << 20, 4 * block_bytes + (8 << 20))))
    # TODO(synk): add a column grid axis for inputs whose single 8-row tile
    # alone would exceed the v7x VMEM budget (not hit by siamese embeddings).

    # Runtime scalar in SMEM so one compiled kernel covers any margin.
    scalars = jnp.array([float(margin)], dtype=jnp.float32)

    kernel = functools.partial(
        _siamese_loss_kernel,
        tile_rows=tile_rows,
        total_rows=rows,
        ragged=ragged,
    )

    partials = pl.pallas_call(
        kernel,
        out_shape=jax.ShapeDtypeStruct((num_blocks, 1, cols), jnp.float32),
        grid_spec=pltpu.PrefetchScalarGridSpec(
            num_scalar_prefetch=0,
            grid=(num_blocks,),
            in_specs=[
                pl.BlockSpec(memory_space=pltpu.MemorySpace.SMEM),
                pl.BlockSpec((tile_rows, cols), lambda i: (i, 0)),
                pl.BlockSpec((tile_rows, cols), lambda i: (i, 0)),
            ],
            out_specs=pl.BlockSpec((1, 1, cols), lambda i: (i, 0, 0)),
        ),
        compiler_params=pltpu.CompilerParams(
            # Independent per-block partials -> parallel axis (dual-TC on v7x).
            dimension_semantics=("parallel",),
            vmem_limit_bytes=vmem_limit,
        ),
        cost_estimate=pl.CostEstimate(
            flops=3 * n,
            transcendentals=0,
            bytes_accessed=2 * n * itemsize + num_blocks * cols * 4,
        ),
    )(scalars, o1, o2)

    # Tiny final reduction + mean scaling outside the kernel (true N, no pad).
    return jnp.sum(partials) * (1.0 / n)


if __name__ == "__main__":
    key = jax.random.PRNGKey(0)
    keys = jax.random.split(key, 10)

    def ref_loss(a, b, m):
        return jnp.mean(jnp.maximum(
            a.astype(jnp.float32) - b.astype(jnp.float32) + m, 0.0))

    # 1) Small siamese-embedding shape (batch, embed_dim).
    a = jax.random.normal(keys[0], (8, 32), dtype=jnp.float32)
    b = jax.random.normal(keys[1], (8, 32), dtype=jnp.float32)
    out = jax.block_until_ready(siamese_loss(a, b, margin=0.5))
    assert jnp.allclose(out, ref_loss(a, b, 0.5), atol=1e-6, rtol=1e-5), out

    # 2) Lane-aligned embed dim: zero-copy native layout, single block.
    a = jax.random.normal(keys[2], (512, 384), dtype=jnp.float32)
    b = jax.random.normal(keys[3], (512, 384), dtype=jnp.float32)
    out = jax.block_until_ready(siamese_loss(a, b, margin=1.25))
    assert jnp.allclose(out, ref_loss(a, b, 1.25), atol=1e-6, rtol=1e-4), out

    # 3) Multi-block grid with a ragged (in-kernel masked) final row tile.
    a = jax.random.normal(keys[4], (3000, 256), dtype=jnp.float32)
    b = jax.random.normal(keys[5], (3000, 256), dtype=jnp.float32)
    out = jax.block_until_ready(siamese_loss(a, b, margin=0.5))
    assert jnp.allclose(out, ref_loss(a, b, 0.5), atol=1e-6, rtol=1e-4), out

    # 4) Odd, non-lane-multiple trailing dim (full-extent column block).
    a = jax.random.normal(keys[6], (64, 50), dtype=jnp.float32)
    b = jax.random.normal(keys[7], (64, 50), dtype=jnp.float32)
    out = jax.block_until_ready(siamese_loss(a, b, margin=0.75))
    assert jnp.allclose(out, ref_loss(a, b, 0.75), atol=1e-6, rtol=1e-4), out

    # 5) bf16 inputs: native-dtype DMA, f32 math in-kernel.
    a = jax.random.normal(keys[8], (256, 384), dtype=jnp.bfloat16)
    b = jax.random.normal(keys[9], (256, 384), dtype=jnp.bfloat16)
    out = jax.block_until_ready(siamese_loss(a, b, margin=0.5))
    assert jnp.allclose(out, ref_loss(a, b, 0.5), atol=1e-5, rtol=1e-3), out

    print("KERNEL_OK")
</pallas_src>

<mosaic_0001>
module attributes {stable_mosaic.version = 11 : i64} {
  func.func @_siamese_loss_kernel(%arg0: i32, %arg1: memref<1xf32, #tpu.memory_space<smem>>, %arg2: memref<8x32xf32, #tpu.memory_space<vmem>>, %arg3: memref<8x32xf32, #tpu.memory_space<vmem>>, %arg4: memref<1x1x32xf32, #tpu.memory_space<vmem>>) attributes {dimension_semantics = [#tpu.dimension_semantics<parallel>], iteration_bounds = array<i64: 1>, scalar_prefetch = 0 : i64, scratch_operands = 0 : i64, tpu.core_type = #tpu.core_type<tc>, window_params = [{transform_indices = @transform_0, window_bounds = array<i64: 1>}, {transform_indices = @transform_1, window_bounds = array<i64: 8, 32>}, {transform_indices = @transform_2, window_bounds = array<i64: 8, 32>}, {transform_indices = @transform_3, window_bounds = array<i64: 1, 1, 32>}]} {
    %c0 = arith.constant 0 : index
    %0 = memref.load %arg1[%c0] : memref<1xf32, #tpu.memory_space<smem>>
    %c0_0 = arith.constant 0 : index
    %c0_1 = arith.constant 0 : index
    %1 = vector.load %arg2[%c0_0, %c0_1] : memref<8x32xf32, #tpu.memory_space<vmem>>, vector<8x32xf32>
    %c0_2 = arith.constant 0 : index
    %c0_3 = arith.constant 0 : index
    %2 = vector.load %arg3[%c0_2, %c0_3] : memref<8x32xf32, #tpu.memory_space<vmem>>, vector<8x32xf32>
    %3 = arith.subf %1, %2 : vector<8x32xf32>
    %4 = vector.broadcast %0 : f32 to vector<8x32xf32>
    %5 = arith.addf %3, %4 : vector<8x32xf32>
    %cst = arith.constant 0.000000e+00 : f32
    %6 = vector.broadcast %cst : f32 to vector<8x32xf32>
    %7 = arith.maximumf %5, %6 : vector<8x32xf32>
    %cst_4 = arith.constant dense<0.000000e+00> : vector<32xf32>
    %8 = vector.multi_reduction <add>, %7, %cst_4 [0] : vector<8x32xf32> to vector<32xf32>
    %9 = vector.shape_cast %8 : vector<32xf32> to vector<1x32xf32>
    %10 = vector.shape_cast %9 : vector<1x32xf32> to vector<1x1x32xf32>
    %c0_5 = arith.constant 0 : index
    %c0_6 = arith.constant 0 : index
    %c0_7 = arith.constant 0 : index
    %11 = vector.load %arg4[%c0_5, %c0_6, %c0_7] : memref<1x1x32xf32, #tpu.memory_space<vmem>>, vector<1x1x32xf32>
    tpu.vector_store %arg4[%c0_5, %c0_6, %c0_7], %10 {strides = array<i32>} : memref<1x1x32xf32, #tpu.memory_space<vmem>>, vector<1x1x32xf32>,
    return
  }
  func.func @transform_0(%arg0: i32) -> i32 {
    %c0_i32 = arith.constant 0 : i32
    %c0_i32_0 = arith.constant 0 : i32
    return %c0_i32 : i32
  }
  func.func @transform_1(%arg0: i32) -> (i32, i32) {
    %c0_i32 = arith.constant 0 : i32
    %c0_i32_0 = arith.constant 0 : i32
    return %arg0, %c0_i32 : i32, i32
  }
  func.func @transform_2(%arg0: i32) -> (i32, i32) {
    %c0_i32 = arith.constant 0 : i32
    %c0_i32_0 = arith.constant 0 : i32
    return %arg0, %c0_i32 : i32, i32
  }
  func.func @transform_3(%arg0: i32) -> (i32, i32, i32) {
    %c0_i32 = arith.constant 0 : i32
    %c0_i32_0 = arith.constant 0 : i32
    %c0_i32_1 = arith.constant 0 : i32
    return %arg0, %c0_i32, %c0_i32_0 : i32, i32, i32
  }
}

</mosaic_0001>

<bundles_post_ra>
// kernel: tpu_custom_call.1
= control target key start
LH: loop header
LB: loop body
LE: loop exit
PB: predicated region body
PF: predicated region fallthrough
CT: control target
= control target key end

     0   :  { %9 = vsyncpa [#allocation4], 0  ;;  %s195_s0 = inlined_call_operand.<no memory space> [shape: f32[1], index: 0, kind: input, shape index: {}]   ;;  %s196_s1 = inlined_call_operand.hbm [shape: f32[8,32], index: 1, kind: input, shape index: {}]   ;;  %s197_s2 = inlined_call_operand.hbm [shape: f32[8,32], index: 2, kind: input, shape index: {}]   ;;  %s198_s3 = inlined_call_operand.hbm [shape: f32[1,1,32], index: 3, kind: output, shape index: {}]  }
   0x1   :  { %10 = vsyncpa [#allocation7], 0 }
   0x2   :  { %11 = vsyncpa [#allocation5], 0  ;;  %s19_s14 = sshll.u32 %s196_s1, 4  ;;  %s160_s15 = smov [#allocation3]   ;;  %s20_s14 = int_to_ptr.hbm [resolvable:$true] %s19_s14 }
   0x3   :  { %s21_s16 = sshll.u32 %s160_s15, 4  ;;  %s30_s19 = sshll.u32 %s197_s2, 4  ;;  %s22_s16 = int_to_ptr.vmem [resolvable:$true] %s21_s16  ;;  %s31_s19 = int_to_ptr.hbm [resolvable:$true] %s30_s19 }
   0x4   :  { %24 = dma.hbm_to_vmem [thread:$0]  %s20_s14, 128, %s22_s16, [#allocation4]  }
   0x5   :  { %s161_s20 = smov [#allocation6]  }
   0x6   :  { %s32_s21 = sshll.u32 %s161_s20, 4  ;;  %s33_s21 = int_to_ptr.vmem [resolvable:$true] %s32_s21 }
   0x7   :  { %35 = dma.hbm_to_vmem [thread:$0]  %s31_s19, 128, %s33_s21, [#allocation7]  }
   0x8   :  { %154 = dma.done.wait [#allocation4], 128  }
   0x9   :  { %155 = vsyncadd [#allocation4], 4294967168 }
   0xa   :  { %156 = dma.done.wait [#allocation7], 128  }
   0xb   :  { %157 = vsyncadd [#allocation7], 4294967168  ;;  %v45_v0 = vld [vmem:[#allocation3] sm:$0xff]  ;;  %v46_v1 = vld [vmem:[#allocation6] sm:$0xff]  ;;  %v48_v2 = vstv %s195_s0  ;;  %vm51_vm0 = vcmask 261120   ;;  %s162_s2 = smov [#allocation8]  }
   0xc   :  { %v47_v3 = vsub.f32 %v45_v0, %v46_v1  ;;  %s66_s23 = sshll.u32 %s162_s2, 4  ;;  %s68_s26 = sshll.u32 %s198_s3, 4  ;;  %vm59_vm1 = vcmask 253952   ;;  %s67_s23 = int_to_ptr.vmem [resolvable:$true] %s66_s23  ;;  %s69_s26 = int_to_ptr.hbm [resolvable:$true] %s68_s26 }
   0xe   :  { %v49_v4 = vadd.f32 %v48_v2, %v47_v3 }
  0x10   :  { %v50_v5 = vmax.f32 %v49_v4, 0.0 }
  0x12   :  { %v52_v6 = vsel %vm51_vm0, %v50_v5, 0.0 }
  0x13   :  { %v53_v7 = vrot.slane %v52_v6, 4 }
  0x15   :  { %v54_v8 = vadd.f32 %v53_v7, %v52_v6 }
  0x17   :  { %v55_v9 = vrot.slane %v54_v8, 2 }
  0x19   :  { %v56_v10 = vadd.f32 %v55_v9, %v54_v8 }
  0x1b   :  { %v57_v11 = vrot.slane %v56_v10, 1 }
  0x1d   :  { %v58_v12 = vadd.f32 %v57_v11, %v56_v10 }
  0x1f   :  { %60 = vst.msk [vmem:[#allocation8] sm:$0x1] %vm59_vm1, %v58_v12 }
  0x20   :  { %71 = dma.vmem_to_hbm [thread:$0]  %s67_s23, 16, %s69_s26, [#allocation5]  }
  0x21   :  { %158 = dma.done.wait [#allocation5], 16  }
  0x22   :  { %159 = vsyncadd [#allocation5], 4294967280 }
  0x23   :  { %76 = vsyncpa [#allocation4], 1 }
  0x24   :  { %77 = vsyncpa [#allocation7], 1 }
  0x25   :  { %78 = vsyncpa [#allocation5], 1 }

</bundles_post_ra>
